<compile_context>
chip_gen: v7x
topology: tpu7x:2x2x1
jax: 0.10.0
libtpu: 0.0.40
codegen_flags: <defaults>
</compile_context>

<pallas_src>
import jax
import jax.numpy as jnp
from jax.experimental import pallas as pl
from jax.experimental.pallas import tpu as pltpu

NUM_CLASSES = 5
CLASS_WEIGHT = (1.0, 3.0, 1.0, 1.0, 1.0)

_LANE = 128
_SUBLANE = 8
_VREG = _SUBLANE * _LANE          # 1024 elements: f32 vreg granule
_DEFAULT_TILE_N = 65536           # batch columns per grid step (multiple of 1024)


def _round_up(x, m):
    return ((x + m - 1) // m) * m


def _make_kernel(num_classes, weights):
    weights = tuple(float(w) for w in weights)

    def kernel(logits_ref, labels_ref, num_ref, den_ref, num_acc, den_acc):
        # logits_ref: (C, R, 128) float (cast to f32 in-kernel)
        # labels_ref: (R, 128) int32; padded entries carry -1 (match no class)
        # num_ref/den_ref: (1, 8, 128) f32 per-shard partial outputs
        # num_acc/den_acc: (8, 128) f32 VMEM vector accumulators
        i = pl.program_id(1)

        @pl.when(i == 0)
        def _init():
            num_acc[...] = jnp.zeros_like(num_acc)
            den_acc[...] = jnp.zeros_like(den_acc)

        labels = labels_ref[...]                                   # (R, 128) i32

        # Class-unrolled dense slabs: pure VPU/EUP elementwise work.
        xs = [logits_ref[k].astype(jnp.float32) for k in range(num_classes)]

        m = xs[0]
        for k in range(1, num_classes):
            m = jnp.maximum(m, xs[k])
        s = jnp.exp(xs[0] - m)
        for k in range(1, num_classes):
            s = s + jnp.exp(xs[k] - m)
        lse = jnp.log(s)

        # Gather-by-select: picked logit and picked weight per element.
        # Padded labels (-1) match nothing -> picked=0 (finite), w=0 -> zero
        # contribution to both num and den.
        picked = jnp.zeros_like(m)
        w = jnp.zeros_like(m)
        for k in range(num_classes):
            sel = labels == k
            picked = jnp.where(sel, xs[k], picked)
            w = jnp.where(sel, weights[k], w)

        nll = (m + lse) - picked                                   # (R, 128)
        num_c = w * nll

        # Fold (R,128) -> (8,128) with cheap vreg adds and accumulate in VMEM.
        r = num_c.shape[0]
        num_acc[...] += jnp.sum(num_c.reshape(r // _SUBLANE, _SUBLANE, _LANE), axis=0)
        den_acc[...] += jnp.sum(w.reshape(r // _SUBLANE, _SUBLANE, _LANE), axis=0)

        @pl.when(i == pl.num_programs(1) - 1)
        def _finalize():
            num_ref[...] = num_acc[...].reshape(num_ref.shape)
            den_ref[...] = den_acc[...].reshape(den_ref.shape)

    return kernel


def weighted_cross_entropy(logits, labels, weight=CLASS_WEIGHT,
                           tile_n=_DEFAULT_TILE_N, num_shards=None):
    """logits: (N, C) float array, labels: (N,) int array. Returns scalar f32 loss."""
    n, c = logits.shape
    weights = tuple(float(v) for v in
                    (weight.tolist() if hasattr(weight, "tolist") else weight))
    assert len(weights) == c

    tile_cap = max(_round_up(int(tile_n), _VREG), _VREG)
    if num_shards is None:
        # Only shard when both shards get >= 2 full tiles of real rows
        # (parallel axis is pure overhead on single-TensorCore chips / small N).
        num_shards = 2 if n >= 4 * tile_cap else 1

    n_eff = max(n, 1)
    n_per_shard = pl.cdiv(n_eff, num_shards)
    tiles_per_shard = max(1, pl.cdiv(n_per_shard, tile_cap))
    # Re-balance tile so padding stays ~one vreg-row per tile, not a full tile.
    tile = _round_up(pl.cdiv(n_per_shard, tiles_per_shard), _VREG)
    rows = tile // _LANE
    n_padded = num_shards * tiles_per_shard * tile

    # Lane-dense layout: classes lead, batch is folded onto (rows, 128) slabs.
    # TODO(synk): if the upstream projection can emit logits already as (C, N),
    # this wrapper transpose/pad (one extra HBM pass over the 5xN array) disappears.
    logits_t = jnp.transpose(logits)                     # (C, N), original dtype
    labels_i = labels.astype(jnp.int32)
    pad = n_padded - n
    if pad:
        logits_t = jnp.pad(logits_t, ((0, 0), (0, pad)))
        labels_i = jnp.pad(labels_i, (0, pad), constant_values=-1)
    logits3 = logits_t.reshape(c, n_padded // _LANE, _LANE)
    labels2 = labels_i.reshape(n_padded // _LANE, _LANE)

    kernel = _make_kernel(c, weights)

    grid_spec = pltpu.PrefetchScalarGridSpec(
        num_scalar_prefetch=0,
        grid=(num_shards, tiles_per_shard),
        in_specs=[
            pl.BlockSpec((c, rows, _LANE),
                         lambda p, i: (0, p * tiles_per_shard + i, 0)),
            pl.BlockSpec((rows, _LANE),
                         lambda p, i: (p * tiles_per_shard + i, 0)),
        ],
        out_specs=(
            pl.BlockSpec((1, _SUBLANE, _LANE), lambda p, i: (p, 0, 0)),
            pl.BlockSpec((1, _SUBLANE, _LANE), lambda p, i: (p, 0, 0)),
        ),
        scratch_shapes=[pltpu.VMEM((_SUBLANE, _LANE), jnp.float32),
                        pltpu.VMEM((_SUBLANE, _LANE), jnp.float32)],
    )

    num_out, den_out = pl.pallas_call(
        kernel,
        out_shape=(
            jax.ShapeDtypeStruct((num_shards, _SUBLANE, _LANE), jnp.float32),
            jax.ShapeDtypeStruct((num_shards, _SUBLANE, _LANE), jnp.float32),
        ),
        grid_spec=grid_spec,
        compiler_params=pltpu.CompilerParams(
            dimension_semantics=("parallel", "arbitrary")),
    )(logits3, labels2)

    # Single tiny reduce + divide in the wrapper (O(1) per kernel, not per step).
    return jnp.sum(num_out) / jnp.sum(den_out)


def myloss_forward(logits, classify_label, stage="l1"):
    """Mirrors Myloss.forward: returns dict with lossCls, loss, and logits passthrough."""
    loss_cls = weighted_cross_entropy(logits, classify_label)
    return {
        stage + "_lossCls": loss_cls,
        stage + "_loss": loss_cls,
        stage + "_logits": logits,
    }


def _reference_loss(logits, labels, weight=CLASS_WEIGHT):
    logp = jax.nn.log_softmax(logits.astype(jnp.float32), axis=-1)
    picked = jnp.take_along_axis(logp, labels[:, None].astype(jnp.int32), axis=-1)[:, 0]
    w = jnp.asarray(weight, dtype=jnp.float32)[labels]
    return -jnp.sum(w * picked) / jnp.sum(w)


if __name__ == "__main__":
    key = jax.random.PRNGKey(0)
    k1, k2, k3, k4 = jax.random.split(key, 4)

    # Small case (single tile, heavy remainder padding exercised).
    N = 8
    logits = jax.random.normal(k1, (N, NUM_CLASSES), dtype=jnp.float32)
    labels = jax.random.randint(k2, (N,), 0, NUM_CLASSES, dtype=jnp.int32)

    ret = myloss_forward(logits, labels, stage="l1")
    jax.block_until_ready(ret)

    ref = _reference_loss(logits, labels)
    assert jnp.allclose(ret["l1_lossCls"], ref, atol=1e-5, rtol=1e-5), (
        ret["l1_lossCls"], ref)
    assert jnp.allclose(ret["l1_loss"], ret["l1_lossCls"])
    assert ret["l1_logits"].shape == (N, NUM_CLASSES)

    # Multi-tile case: several inner grid steps per shard, both shards carrying
    # real rows, rebalanced tile + padding path, VMEM accumulator across steps.
    N2 = 5000
    logits2 = jax.random.normal(k3, (N2, NUM_CLASSES), dtype=jnp.float32)
    labels2 = jax.random.randint(k4, (N2,), 0, NUM_CLASSES, dtype=jnp.int32)
    loss2 = weighted_cross_entropy(logits2, labels2, tile_n=1024, num_shards=2)
    jax.block_until_ready(loss2)
    ref2 = _reference_loss(logits2, labels2)
    assert jnp.allclose(loss2, ref2, atol=1e-5, rtol=1e-5), (loss2, ref2)

    # bf16 logits path (cast to f32 happens inside the kernel).
    logits3 = logits2.astype(jnp.bfloat16)
    loss3 = weighted_cross_entropy(logits3, labels2, tile_n=2048)
    jax.block_until_ready(loss3)
    ref3 = _reference_loss(logits3, labels2)
    assert jnp.allclose(loss3, ref3, atol=1e-4, rtol=1e-4), (loss3, ref3)

    print("KERNEL_OK")
</pallas_src>

<mosaic_0001>
module attributes {stable_mosaic.version = 11 : i64} {
  func.func @kernel(%arg0: i32, %arg1: i32, %arg2: memref<5x8x128xf32, #tpu.memory_space<vmem>>, %arg3: memref<8x128xi32, #tpu.memory_space<vmem>>, %arg4: memref<1x8x128xf32, #tpu.memory_space<vmem>>, %arg5: memref<1x8x128xf32, #tpu.memory_space<vmem>>, %arg6: memref<8x128xf32, #tpu.memory_space<vmem>>, %arg7: memref<8x128xf32, #tpu.memory_space<vmem>>) attributes {dimension_semantics = [#tpu.dimension_semantics<parallel>, #tpu.dimension_semantics<arbitrary>], iteration_bounds = array<i64: 1, 1>, scalar_prefetch = 0 : i64, scratch_operands = 2 : i64, tpu.core_type = #tpu.core_type<tc>, window_params = [{transform_indices = @transform_0, window_bounds = array<i64: 5, 8, 128>}, {transform_indices = @transform_1, window_bounds = array<i64: 8, 128>}, {transform_indices = @transform_2, window_bounds = array<i64: 1, 8, 128>}, {transform_indices = @transform_3, window_bounds = array<i64: 1, 8, 128>}]} {
    %c0_i32 = arith.constant 0 : i32
    %0 = arith.cmpi eq, %arg1, %c0_i32 : i32
    %1 = arith.extui %0 : i1 to i32
    %c0_i32_0 = arith.constant 0 : i32
    %2 = arith.cmpi ne, %1, %c0_i32_0 : i32
    scf.if %2 {
      %cst_32 = arith.constant 0.000000e+00 : f32
      %76 = vector.broadcast %cst_32 : f32 to vector<8x128xf32>
      %c0_33 = arith.constant 0 : index
      %c0_34 = arith.constant 0 : index
      %77 = vector.load %arg6[%c0_33, %c0_34] : memref<8x128xf32, #tpu.memory_space<vmem>>, vector<8x128xf32>
      tpu.vector_store %arg6[%c0_33, %c0_34], %76 {strides = array<i32>} : memref<8x128xf32, #tpu.memory_space<vmem>>, vector<8x128xf32>,
      %cst_35 = arith.constant 0.000000e+00 : f32
      %78 = vector.broadcast %cst_35 : f32 to vector<8x128xf32>
      %c0_36 = arith.constant 0 : index
      %c0_37 = arith.constant 0 : index
      %79 = vector.load %arg7[%c0_36, %c0_37] : memref<8x128xf32, #tpu.memory_space<vmem>>, vector<8x128xf32>
      tpu.vector_store %arg7[%c0_36, %c0_37], %78 {strides = array<i32>} : memref<8x128xf32, #tpu.memory_space<vmem>>, vector<8x128xf32>,
    } else {
    }
    %c0 = arith.constant 0 : index
    %c0_1 = arith.constant 0 : index
    %3 = vector.load %arg3[%c0, %c0_1] : memref<8x128xi32, #tpu.memory_space<vmem>>, vector<8x128xi32>
    %c0_2 = arith.constant 0 : index
    %c0_3 = arith.constant 0 : index
    %c0_4 = arith.constant 0 : index
    %4 = vector.load %arg2[%c0_2, %c0_3, %c0_4] : memref<5x8x128xf32, #tpu.memory_space<vmem>>, vector<1x8x128xf32>
    %5 = vector.shape_cast %4 : vector<1x8x128xf32> to vector<8x128xf32>
    %c1 = arith.constant 1 : index
    %c0_5 = arith.constant 0 : index
    %c0_6 = arith.constant 0 : index
    %6 = vector.load %arg2[%c1, %c0_5, %c0_6] : memref<5x8x128xf32, #tpu.memory_space<vmem>>, vector<1x8x128xf32>
    %7 = vector.shape_cast %6 : vector<1x8x128xf32> to vector<8x128xf32>
    %c2 = arith.constant 2 : index
    %c0_7 = arith.constant 0 : index
    %c0_8 = arith.constant 0 : index
    %8 = vector.load %arg2[%c2, %c0_7, %c0_8] : memref<5x8x128xf32, #tpu.memory_space<vmem>>, vector<1x8x128xf32>
    %9 = vector.shape_cast %8 : vector<1x8x128xf32> to vector<8x128xf32>
    %c3 = arith.constant 3 : index
    %c0_9 = arith.constant 0 : index
    %c0_10 = arith.constant 0 : index
    %10 = vector.load %arg2[%c3, %c0_9, %c0_10] : memref<5x8x128xf32, #tpu.memory_space<vmem>>, vector<1x8x128xf32>
    %11 = vector.shape_cast %10 : vector<1x8x128xf32> to vector<8x128xf32>
    %c4 = arith.constant 4 : index
    %c0_11 = arith.constant 0 : index
    %c0_12 = arith.constant 0 : index
    %12 = vector.load %arg2[%c4, %c0_11, %c0_12] : memref<5x8x128xf32, #tpu.memory_space<vmem>>, vector<1x8x128xf32>
    %13 = vector.shape_cast %12 : vector<1x8x128xf32> to vector<8x128xf32>
    %14 = arith.maximumf %5, %7 : vector<8x128xf32>
    %15 = arith.maximumf %14, %9 : vector<8x128xf32>
    %16 = arith.maximumf %15, %11 : vector<8x128xf32>
    %17 = arith.maximumf %16, %13 : vector<8x128xf32>
    %18 = arith.subf %5, %17 : vector<8x128xf32>
    %19 = math.exp %18 : vector<8x128xf32>
    %20 = arith.subf %7, %17 : vector<8x128xf32>
    %21 = math.exp %20 : vector<8x128xf32>
    %22 = arith.addf %19, %21 : vector<8x128xf32>
    %23 = arith.subf %9, %17 : vector<8x128xf32>
    %24 = math.exp %23 : vector<8x128xf32>
    %25 = arith.addf %22, %24 : vector<8x128xf32>
    %26 = arith.subf %11, %17 : vector<8x128xf32>
    %27 = math.exp %26 : vector<8x128xf32>
    %28 = arith.addf %25, %27 : vector<8x128xf32>
    %29 = arith.subf %13, %17 : vector<8x128xf32>
    %30 = math.exp %29 : vector<8x128xf32>
    %31 = arith.addf %28, %30 : vector<8x128xf32>
    %32 = math.log %31 : vector<8x128xf32>
    %cst = arith.constant 0.000000e+00 : f32
    %33 = vector.broadcast %cst : f32 to vector<8x128xf32>
    %cst_13 = arith.constant 0.000000e+00 : f32
    %34 = vector.broadcast %cst_13 : f32 to vector<8x128xf32>
    %c0_i32_14 = arith.constant 0 : i32
    %35 = vector.broadcast %c0_i32_14 : i32 to vector<8x128xi32>
    %36 = arith.cmpi eq, %3, %35 : vector<8x128xi32>
    %37 = arith.select %36, %5, %33 : vector<8x128xi1>, vector<8x128xf32>
    %cst_15 = arith.constant 1.000000e+00 : f32
    %38 = vector.broadcast %cst_15 : f32 to vector<8x128xf32>
    %39 = arith.select %36, %38, %34 : vector<8x128xi1>, vector<8x128xf32>
    %c1_i32 = arith.constant 1 : i32
    %40 = vector.broadcast %c1_i32 : i32 to vector<8x128xi32>
    %41 = arith.cmpi eq, %3, %40 : vector<8x128xi32>
    %42 = arith.select %41, %7, %37 : vector<8x128xi1>, vector<8x128xf32>
    %cst_16 = arith.constant 3.000000e+00 : f32
    %43 = vector.broadcast %cst_16 : f32 to vector<8x128xf32>
    %44 = arith.select %41, %43, %39 : vector<8x128xi1>, vector<8x128xf32>
    %c2_i32 = arith.constant 2 : i32
    %45 = vector.broadcast %c2_i32 : i32 to vector<8x128xi32>
    %46 = arith.cmpi eq, %3, %45 : vector<8x128xi32>
    %47 = arith.select %46, %9, %42 : vector<8x128xi1>, vector<8x128xf32>
    %cst_17 = arith.constant 1.000000e+00 : f32
    %48 = vector.broadcast %cst_17 : f32 to vector<8x128xf32>
    %49 = arith.select %46, %48, %44 : vector<8x128xi1>, vector<8x128xf32>
    %c3_i32 = arith.constant 3 : i32
    %50 = vector.broadcast %c3_i32 : i32 to vector<8x128xi32>
    %51 = arith.cmpi eq, %3, %50 : vector<8x128xi32>
    %52 = arith.select %51, %11, %47 : vector<8x128xi1>, vector<8x128xf32>
    %cst_18 = arith.constant 1.000000e+00 : f32
    %53 = vector.broadcast %cst_18 : f32 to vector<8x128xf32>
    %54 = arith.select %51, %53, %49 : vector<8x128xi1>, vector<8x128xf32>
    %c4_i32 = arith.constant 4 : i32
    %55 = vector.broadcast %c4_i32 : i32 to vector<8x128xi32>
    %56 = arith.cmpi eq, %3, %55 : vector<8x128xi32>
    %57 = arith.select %56, %13, %52 : vector<8x128xi1>, vector<8x128xf32>
    %cst_19 = arith.constant 1.000000e+00 : f32
    %58 = vector.broadcast %cst_19 : f32 to vector<8x128xf32>
    %59 = arith.select %56, %58, %54 : vector<8x128xi1>, vector<8x128xf32>
    %60 = arith.addf %17, %32 : vector<8x128xf32>
    %61 = arith.subf %60, %57 : vector<8x128xf32>
    %62 = arith.mulf %59, %61 : vector<8x128xf32>
    %c0_20 = arith.constant 0 : index
    %c0_21 = arith.constant 0 : index
    %63 = vector.load %arg6[%c0_20, %c0_21] : memref<8x128xf32, #tpu.memory_space<vmem>>, vector<8x128xf32>
    %64 = vector.shape_cast %62 : vector<8x128xf32> to vector<1x8x128xf32>
    %cst_22 = arith.constant dense<0.000000e+00> : vector<8x128xf32>
    %65 = vector.multi_reduction <add>, %64, %cst_22 [0] : vector<1x8x128xf32> to vector<8x128xf32>
    %66 = arith.addf %63, %65 : vector<8x128xf32>
    %c0_23 = arith.constant 0 : index
    %c0_24 = arith.constant 0 : index
    %67 = vector.load %arg6[%c0_23, %c0_24] : memref<8x128xf32, #tpu.memory_space<vmem>>, vector<8x128xf32>
    tpu.vector_store %arg6[%c0_23, %c0_24], %66 {strides = array<i32>} : memref<8x128xf32, #tpu.memory_space<vmem>>, vector<8x128xf32>,
    %c0_25 = arith.constant 0 : index
    %c0_26 = arith.constant 0 : index
    %68 = vector.load %arg7[%c0_25, %c0_26] : memref<8x128xf32, #tpu.memory_space<vmem>>, vector<8x128xf32>
    %69 = vector.shape_cast %59 : vector<8x128xf32> to vector<1x8x128xf32>
    %cst_27 = arith.constant dense<0.000000e+00> : vector<8x128xf32>
    %70 = vector.multi_reduction <add>, %69, %cst_27 [0] : vector<1x8x128xf32> to vector<8x128xf32>
    %71 = arith.addf %68, %70 : vector<8x128xf32>
    %c0_28 = arith.constant 0 : index
    %c0_29 = arith.constant 0 : index
    %72 = vector.load %arg7[%c0_28, %c0_29] : memref<8x128xf32, #tpu.memory_space<vmem>>, vector<8x128xf32>
    tpu.vector_store %arg7[%c0_28, %c0_29], %71 {strides = array<i32>} : memref<8x128xf32, #tpu.memory_space<vmem>>, vector<8x128xf32>,
    %c0_i32_30 = arith.constant 0 : i32
    %73 = arith.cmpi eq, %arg1, %c0_i32_30 : i32
    %74 = arith.extui %73 : i1 to i32
    %c0_i32_31 = arith.constant 0 : i32
    %75 = arith.cmpi ne, %74, %c0_i32_31 : i32
    scf.if %75 {
      %c0_32 = arith.constant 0 : index
      %c0_33 = arith.constant 0 : index
      %76 = vector.load %arg6[%c0_32, %c0_33] : memref<8x128xf32, #tpu.memory_space<vmem>>, vector<8x128xf32>
      %77 = vector.shape_cast %76 : vector<8x128xf32> to vector<1x8x128xf32>
      %c0_34 = arith.constant 0 : index
      %c0_35 = arith.constant 0 : index
      %c0_36 = arith.constant 0 : index
      %78 = vector.load %arg4[%c0_34, %c0_35, %c0_36] : memref<1x8x128xf32, #tpu.memory_space<vmem>>, vector<1x8x128xf32>
      tpu.vector_store %arg4[%c0_34, %c0_35, %c0_36], %77 {strides = array<i32>} : memref<1x8x128xf32, #tpu.memory_space<vmem>>, vector<1x8x128xf32>,
      %c0_37 = arith.constant 0 : index
      %c0_38 = arith.constant 0 : index
      %79 = vector.load %arg7[%c0_37, %c0_38] : memref<8x128xf32, #tpu.memory_space<vmem>>, vector<8x128xf32>
      %80 = vector.shape_cast %79 : vector<8x128xf32> to vector<1x8x128xf32>
      %c0_39 = arith.constant 0 : index
      %c0_40 = arith.constant 0 : index
      %c0_41 = arith.constant 0 : index
      %81 = vector.load %arg5[%c0_39, %c0_40, %c0_41] : memref<1x8x128xf32, #tpu.memory_space<vmem>>, vector<1x8x128xf32>
      tpu.vector_store %arg5[%c0_39, %c0_40, %c0_41], %80 {strides = array<i32>} : memref<1x8x128xf32, #tpu.memory_space<vmem>>, vector<1x8x128xf32>,
    } else {
    }
    return
  }
  func.func @transform_0(%arg0: i32, %arg1: i32) -> (i32, i32, i32) {
    %c1_i32 = arith.constant 1 : i32
    %0 = arith.muli %arg0, %c1_i32 : i32
    %1 = arith.addi %0, %arg1 : i32
    %c0_i32 = arith.constant 0 : i32
    %c0_i32_0 = arith.constant 0 : i32
    %c0_i32_1 = arith.constant 0 : i32
    return %c0_i32, %1, %c0_i32_0 : i32, i32, i32
  }
  func.func @transform_1(%arg0: i32, %arg1: i32) -> (i32, i32) {
    %c1_i32 = arith.constant 1 : i32
    %0 = arith.muli %arg0, %c1_i32 : i32
    %1 = arith.addi %0, %arg1 : i32
    %c0_i32 = arith.constant 0 : i32
    %c0_i32_0 = arith.constant 0 : i32
    return %1, %c0_i32 : i32, i32
  }
  func.func @transform_2(%arg0: i32, %arg1: i32) -> (i32, i32, i32) {
    %c0_i32 = arith.constant 0 : i32
    %c0_i32_0 = arith.constant 0 : i32
    %c0_i32_1 = arith.constant 0 : i32
    return %arg0, %c0_i32, %c0_i32_0 : i32, i32, i32
  }
  func.func @transform_3(%arg0: i32, %arg1: i32) -> (i32, i32, i32) {
    %c0_i32 = arith.constant 0 : i32
    %c0_i32_0 = arith.constant 0 : i32
    %c0_i32_1 = arith.constant 0 : i32
    return %arg0, %c0_i32, %c0_i32_0 : i32, i32, i32
  }
}

</mosaic_0001>

<bundles_post_ra>
// kernel: tpu_custom_call.1
= control target key start
LH: loop header
LB: loop body
LE: loop exit
PB: predicated region body
PF: predicated region fallthrough
CT: control target
= control target key end

     0   :  { %9 = vsyncpa [#allocation5], 0  ;;  %s380_s0 = inlined_call_operand.hbm [shape: f32[5,8,128], index: 0, kind: input, shape index: {}]   ;;  %s381_s1 = inlined_call_operand.hbm [shape: s32[8,128], index: 1, kind: input, shape index: {}]   ;;  %s382_s2 = inlined_call_operand.hbm [shape: f32[1,8,128], index: 2, kind: output, shape index: {0}]   ;;  %s383_s3 = inlined_call_operand.hbm [shape: f32[1,8,128], index: 3, kind: output, shape index: {1}]  }
   0x1   :  { %10 = vsyncpa [#allocation8], 0 }
   0x2   :  { %11 = vsyncpa [#allocation6], 0 }
   0x3   :  { %12 = vsyncpa [#allocation11], 0  ;;  %s268_s12 = smov [#allocation4]   ;;  %s172_s16 = scalar_lea.hbm %s380_s0, 640 }
   0x4   :  { %s21_s13 = sshll.u32 %s268_s12, 4  ;;  %p173_p0 = scmp.ne.s32.totalorder %s380_s0, %s172_s16  ;;  %s22_s13 = int_to_ptr.vmem [resolvable:$true] %s21_s13 }
   0x5   :  { %p176_p1 = scmp.lt.u32.totalorder %s172_s16, %s380_s0 }
   0x7   :  { %p178_p2 = pnand %p176_p1, %p173_p0 }
   0x9   :  { %181 = shalt.err (!%p178_p2)
}
   0xa   :  { %s182_s21 = scalar_lea.vmem %s22_s13, 640  ;;  %p187_p4 = scmp.lt.s32.totalorder %s22_s13, %s22_s13 }
   0xb   :  { %p183_p3 = scmp.ne.s32.totalorder %s22_s13, %s182_s21  ;;  %p188_p5 = scmp.lt.s32.totalorder %s182_s21, %s182_s21 }
   0xd   :  { %p189_p6 = por %p188_p5, %p187_p4 }
   0xf   :  { %p190_p7 = pnand %p189_p6, %p183_p3 }
  0x11   :  { %193 = shalt.err (!%p190_p7)
}
  0x12   :  { %s269_s22 = smov 128   ;;  %s270_s23 = smov 8  }
  0x13   :  { %27 = dma.hbm_to_vmem [thread:$0]  %s380_s0, 640, %s22_s13, [#allocation5], %s269_s22, %s269_s22, %s270_s23  }
  0x14   :  { %s271_s26 = smov [#allocation7]   ;;  %s194_s30 = scalar_lea.hbm %s381_s1, 128 }
  0x15   :  { %s37_s27 = sshll.u32 %s271_s26, 4  ;;  %p195_p8 = scmp.ne.s32.totalorder %s381_s1, %s194_s30  ;;  %s38_s27 = int_to_ptr.vmem [resolvable:$true] %s37_s27 }
  0x16   :  { %p198_p9 = scmp.lt.u32.totalorder %s194_s30, %s381_s1 }
  0x18   :  { %p200_p10 = pnand %p198_p9, %p195_p8 }
  0x1a   :  { %203 = shalt.err (!%p200_p10)
}
  0x1b   :  { %s204_s8 = scalar_lea.vmem %s38_s27, 128  ;;  %p209_p12 = scmp.lt.s32.totalorder %s38_s27, %s38_s27 }
  0x1c   :  { %p205_p11 = scmp.ne.s32.totalorder %s38_s27, %s204_s8  ;;  %p210_p13 = scmp.lt.s32.totalorder %s204_s8, %s204_s8 }
  0x1e   :  { %p211_p0 = por %p210_p13, %p209_p12 }
  0x20   :  { %p212_p1 = pnand %p211_p0, %p205_p11 }
  0x22   :  { %215 = shalt.err (!%p212_p1)
}
  0x23   :  { %40 = dma.hbm_to_vmem [thread:$0]  %s381_s1, 128, %s38_s27, [#allocation8]  }
  0x24   :  { %260 = dma.done.wait [#allocation5], 640  }
  0x25   :  { %261 = vsyncadd [#allocation5], 4294966656 }
  0x26   :  { %262 = dma.done.wait [#allocation8], 128  }
  0x27   :  { %263 = vsyncadd [#allocation8], 4294967168  ;;  %v319_v0 = vld [vmem:[#allocation7] sm:$0xff]  ;;  %v56_v1 = vld [vmem:[#allocation4] sm:$0xff]  ;;  %v272_v6 = vmov 0.0   ;;  %s273_s1 = smov [#allocation10]  }
  0x28   :  { %v321_v2 = vld [vmem:[#allocation4 + $0x8] sm:$0xff]  ;;  %v323_v3 = vld [vmem:[#allocation4 + $0x10] sm:$0xff]  ;;  %vm90_vm0 = vcmp.eq.s32.totalorder %v319_v0, 0  ;;  %v62_v5 = vld [vmem:[#allocation4 + $0x18] sm:$0xff]  ;;  %vm93_vm1 = vcmp.eq.s32.totalorder %v319_v0, 1  ;;  %s139_s10 = sshll.u32 %s273_s1, 4  ;;  %s140_s10 = int_to_ptr.vmem [resolvable:$true] %s139_s10 }
  0x29   :  { %v65_v4 = vmax.f32 %v56_v1, %v321_v2  ;;  %v92_v7 = vsel %vm90_vm0, 1.0, %v272_v6  ;;  %vm96_vm2 = vcmp.eq.s32.totalorder %v319_v0, 2  ;;  %v64_v10 = vld [vmem:[#allocation4 + $0x20] sm:$0xff]  ;;  %vm99_vm3 = vcmp.eq.s32.totalorder %v319_v0, 3  ;;  %s216_s11 = scalar_lea.vmem %s140_s10, 128  ;;  %p221_p3 = scmp.lt.s32.totalorder %s140_s10, %s140_s10 }
  0x2a   :  { %v95_v9 = vsel %vm93_vm1, 3.0, %v92_v7  ;;  %vm102_vm4 = vcmp.eq.s32.totalorder %v319_v0, 4  ;;  %p217_p2 = scmp.ne.s32.totalorder %s140_s10, %s216_s11  ;;  %p222_p4 = scmp.lt.s32.totalorder %s216_s11, %s216_s11 }
  0x2b   :  { %v66_v8 = vmax.f32 %v65_v4, %v323_v3  ;;  %v98_v11 = vsel %vm96_vm2, 1.0, %v95_v9 }
  0x2c   :  { %v101_v13 = vsel %vm99_vm3, 1.0, %v98_v11  ;;  %p223_p5 = por %p222_p4, %p221_p3 }
  0x2d   :  { %v67_v12 = vmax.f32 %v66_v8, %v62_v5  ;;  %v104_v14 = vsel %vm102_vm4, 1.0, %v101_v13 }
  0x2e   :  { %122 = vst [vmem:[#allocation10] sm:$0xff] %v104_v14  ;;  %p224_p6 = pnand %p223_p5, %p217_p2 }
  0x2f   :  { %v68_v15 = vmax.f32 %v67_v12, %v64_v10 }
  0x30   :  { %227 = shalt.err (!%p224_p6)
}
  0x31   :  { %s228_s14 = scalar_lea.hbm %s383_s3, 128 }
  0x32   :  { %p229_p7 = scmp.ne.s32.totalorder %s383_s3, %s228_s14  ;;  %p232_p8 = scmp.lt.u32.totalorder %s228_s14, %s383_s3 }
  0x34   :  { %p234_p9 = pnand %p232_p8, %p229_p7 }
  0x36   :  { %237 = shalt.err (!%p234_p9)
}
  0x37   :  { %142 = dma.vmem_to_hbm [thread:$0]  %s140_s10, 128, %s383_s3, [#allocation11]   ;;  %v69_v16 = vsub.f32 %v56_v1, %v68_v15  ;;  %v72_v17 = vsub.f32 %v321_v2, %v68_v15  ;;  %v76_v18 = vsub.f32 %v323_v3, %v68_v15  ;;  %v80_v19 = vsub.f32 %v62_v5, %v68_v15 }
  0x38   :  { %v84_v20 = vsub.f32 %v64_v10, %v68_v15  ;;  %v91_v35 = vsel %vm90_vm0, %v56_v1, 0.0  ;;  %s274_s3 = smov [#allocation9]  }
  0x39   :  { %v70_v21 = vmul.f32 1.442695, %v69_v16  ;;  %v73_v22 = vmul.f32 1.442695, %v72_v17  ;;  %v77_v23 = vmul.f32 1.442695, %v76_v18  ;;  %v94_v36 = vsel %vm93_vm1, %v321_v2, %v91_v35 }
  0x3a   :  { %v81_v24 = vmul.f32 1.442695, %v80_v19  ;;  %v85_v25 = vmul.f32 1.442695, %v84_v20  ;;  %v97_v37 = vsel %vm96_vm2, %v323_v3, %v94_v36  ;;  %s129_s21 = sshll.u32 %s274_s3, 4  ;;  %s130_s21 = int_to_ptr.vmem [resolvable:$true] %s129_s21 }
  0x3b   :  { %160 = vpow2.f32 %v70_v21  ;;  %v100_v38 = vsel %vm99_vm3, %v62_v5, %v97_v37  ;;  %s238_s22 = scalar_lea.vmem %s130_s21, 128  ;;  %p243_p11 = scmp.lt.s32.totalorder %s130_s21, %s130_s21 }
  0x3c   :  { %162 = vpow2.f32 %v73_v22  ;;  %v103_v41 = vsel %vm102_vm4, %v64_v10, %v100_v38  ;;  %p239_p10 = scmp.ne.s32.totalorder %s130_s21, %s238_s22  ;;  %p244_p12 = scmp.lt.s32.totalorder %s238_s22, %s238_s22 }
  0x3d   :  { %164 = vpow2.f32 %v77_v23 }
  0x3e   :  { %166 = vpow2.f32 %v81_v24  ;;  %p245_p13 = por %p244_p12, %p243_p11 }
  0x3f   :  { %168 = vpow2.f32 %v85_v25 }
  0x40   :  { %p246_p0 = pnand %p245_p13, %p239_p10 }
  0x45   :  { %v161_v26 = vpop.eup %160 }
  0x46   :  { %v163_v27 = vpop.eup %162 }
  0x47   :  { %v165_v28 = vpop.eup %164  ;;  %v75_v29 = vadd.f32 %v163_v27, %v161_v26 }
  0x48   :  { %v167_v30 = vpop.eup %166 }
  0x49   :  { %v79_v31 = vadd.f32 %v165_v28, %v75_v29  ;;  %v169_v32 = vpop.eup %168 }
  0x4b   :  { %v83_v33 = vadd.f32 %v167_v30, %v79_v31 }
  0x4d   :  { %v87_v34 = vadd.f32 %v169_v32, %v83_v33 }
  0x4f   :  { %170 = vlog2.f32 %v87_v34 }
  0x59   :  { %v171_v39 = vpop.eup %170 }
  0x5a   :  { %v89_v40 = vmul.f32 0.6931472, %v171_v39 }
  0x5c   :  { %v105_v42 = vadd.f32 %v89_v40, %v68_v15 }
  0x5e   :  { %v106_v43 = vsub.f32 %v105_v42, %v103_v41 }
  0x60   :  { %v107_v44 = vmul.f32 %v106_v43, %v104_v14 }
  0x62   :  { %120 = vst [vmem:[#allocation9] sm:$0xff] %v107_v44 }
  0x63   :  { %249 = shalt.err (!%p246_p0)
}
  0x64   :  { %s250_s25 = scalar_lea.hbm %s382_s2, 128 }
  0x65   :  { %p251_p1 = scmp.ne.s32.totalorder %s382_s2, %s250_s25  ;;  %p254_p2 = scmp.lt.u32.totalorder %s250_s25, %s382_s2 }
  0x67   :  { %p256_p3 = pnand %p254_p2, %p251_p1 }
  0x69   :  { %259 = shalt.err (!%p256_p3)
}
  0x6a   :  { %132 = dma.vmem_to_hbm [thread:$0]  %s130_s21, 128, %s382_s2, [#allocation6]  }
  0x6b   :  { %264 = dma.done.wait [#allocation6], 128  }
  0x6c   :  { %265 = vsyncadd [#allocation6], 4294967168 }
  0x6d   :  { %266 = dma.done.wait [#allocation11], 128  }
  0x6e   :  { %267 = vsyncadd [#allocation11], 4294967168 }
  0x6f   :  { %149 = vsyncpa [#allocation5], 1 }
  0x70   :  { %150 = vsyncpa [#allocation8], 1 }
  0x71   :  { %151 = vsyncpa [#allocation6], 1 }
  0x72   :  { %152 = vsyncpa [#allocation11], 1 }

</bundles_post_ra>
